<compile_context>
chip_gen: v7x
topology: tpu7x:2x2x1
jax: 0.10.0
libtpu: 0.0.40
codegen_flags: <defaults>
</compile_context>

<pallas_src>
import functools

import jax
import jax.numpy as jnp
from jax.experimental import pallas as pl
from jax.experimental.pallas import tpu as pltpu

LANE = 128  # TPU lane width (last-dim alignment)


def _round_up(x: int, m: int) -> int:
    return (x + m - 1) // m * m


def mlp_kernel(x_ref, w1_ref, b1_ref, w2_ref, b2_ref, w3_ref, b3_ref, o_ref):
    """Fused 3-layer MLP on one (tb, in_dim) activation tile.

    Matmuls run in bf16 on the MXU with f32 accumulation; bias add and ReLU are
    done in f32 on the VPU, then re-cast to bf16 for the next matmul. The input
    tile is cast to bf16 here (cheaper than a separate host-side cast pass).
    """
    cdt = w1_ref.dtype
    x = x_ref[...].astype(cdt)
    h1 = jnp.dot(x, w1_ref[...], preferred_element_type=jnp.float32) + b1_ref[...]
    h1 = jnp.maximum(h1, 0.0).astype(cdt)
    h2 = jnp.dot(h1, w2_ref[...], preferred_element_type=jnp.float32) + b2_ref[...]
    h2 = jnp.maximum(h2, 0.0).astype(cdt)
    out = jnp.dot(h2, w3_ref[...], preferred_element_type=jnp.float32) + b3_ref[...]
    o_ref[...] = out.astype(o_ref.dtype)


def prepare_params(params, *, weight_dtype=jnp.bfloat16):
    """One-time pad + cast of the weights (hoisted out of the per-call path).

    Zero padding is exact: padded weight rows/cols and bias lanes contribute 0,
    and padded output lanes are sliced off in `network_forward`.
    """
    w1, b1, w2, b2, w3, b3 = params
    in_dim, hidden = w1.shape
    out_dim = w3.shape[1]
    hid_p = _round_up(hidden, LANE)
    out_p = _round_up(out_dim, LANE)

    def pad2(a, rows, cols):
        a = a.reshape(1, -1) if a.ndim == 1 else a
        return jnp.pad(a, ((0, rows - a.shape[0]), (0, cols - a.shape[1])))

    # K = in_dim stays unpadded so the raw (unpadded) x can feed the first dot.
    w1p = pad2(w1, in_dim, hid_p).astype(weight_dtype)
    w2p = pad2(w2, hid_p, hid_p).astype(weight_dtype)
    w3p = pad2(w3, hid_p, out_p).astype(weight_dtype)
    b1p = pad2(b1, 1, hid_p).astype(jnp.float32)
    b2p = pad2(b2, 1, hid_p).astype(jnp.float32)
    b3p = pad2(b3, 1, out_p).astype(jnp.float32)

    meta = dict(in_dim=in_dim, out_dim=out_dim, hid_p=hid_p, out_p=out_p)
    return (w1p, b1p, w2p, b2p, w3p, b3p), meta


def _pick_batch_tile(batch: int, batch_tile: int) -> int:
    if batch <= 256:
        return batch                       # single full-extent tile, no padding
    if batch <= batch_tile:
        # Split into >=2 grid steps so both v7x TensorCores get work.
        return _round_up((batch + 1) // 2, 8)
    return batch_tile


def network_forward(x, prepared, *, batch_tile: int = 512,
                    single_buffer_weights: bool = True):
    """Run the 3-layer MLP as one fused, batch-tiled, weight-resident kernel."""
    (w1p, b1p, w2p, b2p, w3p, b3p), meta = prepared
    in_dim, out_dim = meta["in_dim"], meta["out_dim"]
    hid_p, out_p = meta["hid_p"], meta["out_p"]
    batch = x.shape[0]
    assert x.shape[1] == in_dim

    tb = _pick_batch_tile(batch, batch_tile)
    batch_p = _round_up(batch, tb)
    xp = x if batch_p == batch else jnp.pad(x, ((0, batch_p - batch), (0, 0)))

    out_dtype = x.dtype
    grid = (batch_p // tb,)

    # Weights / biases: same block every grid step -> loaded once, VMEM-resident.
    # Single-buffered: the block index never changes, so double-buffering them
    # only doubles their VMEM footprint.
    def resident(shape):
        if single_buffer_weights:
            return pl.BlockSpec(shape, lambda i: (0, 0),
                                pipeline_mode=pl.Buffered(1))
        return pl.BlockSpec(shape, lambda i: (0, 0))

    # ---------------- VMEM accounting ----------------
    isz = lambda a: jnp.dtype(a.dtype).itemsize
    w_buf = 1 if single_buffer_weights else 2
    bytes_w = w_buf * sum(a.size * isz(a)
                          for a in (w1p, w2p, w3p, b1p, b2p, b3p))
    # double-buffered activation in/out tiles
    bytes_io = 2 * tb * (in_dim * isz(x) + out_p * jnp.dtype(out_dtype).itemsize)
    # in-kernel temporaries: bf16 x, f32 + bf16 h1/h2, f32 out
    bytes_tmp = tb * (in_dim * 2 + 2 * hid_p * (4 + 2) + out_p * 4)
    est = bytes_w + bytes_io + bytes_tmp

    try:
        vmem_cap = pltpu.get_tpu_info().vmem_capacity_bytes
    except Exception:
        vmem_cap = 64 << 20  # conservative (v7x per-TC size)
    budget = int(vmem_cap * 0.85)  # leave headroom for Mosaic internal scratch
    # TODO(synk): if resident weights alone exceed ~60% of `budget` (very large
    # hidden sizes), a hidden-dim (K/N)-tiled fallback grid is needed here.
    vmem_limit = int(min(max(int(est * 1.25) + (4 << 20), 32 << 20), budget))

    out_padded = pl.pallas_call(
        mlp_kernel,
        out_shape=jax.ShapeDtypeStruct((batch_p, out_p), out_dtype),
        grid=grid,
        in_specs=[
            pl.BlockSpec((tb, in_dim), lambda i: (i, 0)),   # activation tile
            resident(w1p.shape), resident(b1p.shape),
            resident(w2p.shape), resident(b2p.shape),
            resident(w3p.shape), resident(b3p.shape),
        ],
        out_specs=pl.BlockSpec((tb, out_p), lambda i: (i, 0)),
        compiler_params=pltpu.CompilerParams(
            dimension_semantics=("parallel",),
            vmem_limit_bytes=vmem_limit,
        ),
    )(xp, w1p, b1p, w2p, b2p, w3p, b3p)

    return out_padded[:batch, :out_dim]


def init_params(key, in_dim, out_dim, hidden_size, dtype=jnp.float32):
    """PyTorch-like uniform(-1/sqrt(fan_in), 1/sqrt(fan_in)) initialization."""
    ks = jax.random.split(key, 6)

    def lin(kw, kb, fan_in, fan_out):
        bound = 1.0 / jnp.sqrt(fan_in)
        w = jax.random.uniform(kw, (fan_in, fan_out), dtype, -bound, bound)
        b = jax.random.uniform(kb, (fan_out,), dtype, -bound, bound)
        return w, b

    w1, b1 = lin(ks[0], ks[1], in_dim, hidden_size)
    w2, b2 = lin(ks[2], ks[3], hidden_size, hidden_size)
    w3, b3 = lin(ks[4], ks[5], hidden_size, out_dim)
    return (w1, b1, w2, b2, w3, b3)


def reference_forward(x, params, compute_dtype=jnp.bfloat16):
    """Pure-JAX reference matching the kernel's bf16-input / f32-accum math."""
    w1, b1, w2, b2, w3, b3 = params
    q = lambda a: a.astype(compute_dtype).astype(jnp.float32)
    h1 = jnp.maximum(q(x) @ q(w1) + b1.reshape(1, -1), 0.0)
    h2 = jnp.maximum(q(h1) @ q(w2) + b2.reshape(1, -1), 0.0)
    return (q(h2) @ q(w3) + b3.reshape(1, -1)).astype(x.dtype)


if __name__ == "__main__":
    # Small shapes consistent with the module's forward: x is (batch, in_dim).
    batch, in_dim, hidden_size, out_dim = 8, 16, 32, 4

    key = jax.random.PRNGKey(0)
    k_x, k_p = jax.random.split(key)
    x = jax.random.normal(k_x, (batch, in_dim), dtype=jnp.float32)
    params = init_params(k_p, in_dim, out_dim, hidden_size)

    prepared = prepare_params(params)   # one-time pad + bf16 cast (hoisted)

    try:
        fwd = jax.jit(functools.partial(network_forward, prepared=prepared))
        out = jax.block_until_ready(fwd(x))
    except Exception:
        # Fallback for JAX builds without single-buffered pipeline_mode support.
        fwd = jax.jit(functools.partial(network_forward, prepared=prepared,
                                        single_buffer_weights=False))
        out = jax.block_until_ready(fwd(x))

    ref = reference_forward(x, params)
    assert out.shape == (batch, out_dim)
    assert jnp.allclose(out, ref, atol=2e-2, rtol=2e-2), "mismatch vs reference"

    print("KERNEL_OK")
</pallas_src>

<mosaic_0001>
module attributes {stable_mosaic.version = 11 : i64} {
  func.func @mlp_kernel(%arg0: i32, %arg1: memref<8x16xf32, #tpu.memory_space<vmem>>, %arg2: memref<16x128xbf16, #tpu.memory_space<vmem>>, %arg3: memref<1x128xf32, #tpu.memory_space<vmem>>, %arg4: memref<128x128xbf16, #tpu.memory_space<vmem>>, %arg5: memref<1x128xf32, #tpu.memory_space<vmem>>, %arg6: memref<128x128xbf16, #tpu.memory_space<vmem>>, %arg7: memref<1x128xf32, #tpu.memory_space<vmem>>, %arg8: memref<8x128xf32, #tpu.memory_space<vmem>>) attributes {dimension_semantics = [#tpu.dimension_semantics<parallel>], iteration_bounds = array<i64: 1>, scalar_prefetch = 0 : i64, scratch_operands = 0 : i64, tpu.core_type = #tpu.core_type<tc>, window_params = [{transform_indices = @transform_0, window_bounds = array<i64: 8, 16>}, {pipeline_mode = #tpu.pipeline_mode<synchronous>, transform_indices = @transform_1, window_bounds = array<i64: 16, 128>}, {pipeline_mode = #tpu.pipeline_mode<synchronous>, transform_indices = @transform_2, window_bounds = array<i64: 1, 128>}, {pipeline_mode = #tpu.pipeline_mode<synchronous>, transform_indices = @transform_3, window_bounds = array<i64: 128, 128>}, {pipeline_mode = #tpu.pipeline_mode<synchronous>, transform_indices = @transform_4, window_bounds = array<i64: 1, 128>}, {pipeline_mode = #tpu.pipeline_mode<synchronous>, transform_indices = @transform_5, window_bounds = array<i64: 128, 128>}, {pipeline_mode = #tpu.pipeline_mode<synchronous>, transform_indices = @transform_6, window_bounds = array<i64: 1, 128>}, {transform_indices = @transform_7, window_bounds = array<i64: 8, 128>}]} {
    %c0 = arith.constant 0 : index
    %c0_0 = arith.constant 0 : index
    %0 = vector.load %arg1[%c0, %c0_0] : memref<8x16xf32, #tpu.memory_space<vmem>>, vector<8x16xf32>
    %1 = arith.truncf %0 : vector<8x16xf32> to vector<8x16xbf16>
    %c0_1 = arith.constant 0 : index
    %c0_2 = arith.constant 0 : index
    %2 = vector.load %arg2[%c0_1, %c0_2] : memref<16x128xbf16, #tpu.memory_space<vmem>>, vector<16x128xbf16>
    %cst = arith.constant dense<0.000000e+00> : vector<8x128xf32>
    %3 = tpu.matmul %1, %2, %cst {dimension_numbers = #tpu.dot_dimension_numbers<[1], [0], [0], [1], [0, 0, 1, 1], [], []>} : vector<8x16xbf16>, vector<16x128xbf16>, vector<8x128xf32> -> vector<8x128xf32>
    %c0_3 = arith.constant 0 : index
    %c0_4 = arith.constant 0 : index
    %4 = vector.load %arg3[%c0_3, %c0_4] : memref<1x128xf32, #tpu.memory_space<vmem>>, vector<1x128xf32>
    %5 = vector.broadcast %4 : vector<1x128xf32> to vector<8x128xf32>
    %6 = arith.addf %3, %5 : vector<8x128xf32>
    %cst_5 = arith.constant 0.000000e+00 : f32
    %7 = vector.broadcast %cst_5 : f32 to vector<8x128xf32>
    %8 = arith.maximumf %6, %7 : vector<8x128xf32>
    %9 = arith.truncf %8 : vector<8x128xf32> to vector<8x128xbf16>
    %c0_6 = arith.constant 0 : index
    %c0_7 = arith.constant 0 : index
    %10 = vector.load %arg4[%c0_6, %c0_7] : memref<128x128xbf16, #tpu.memory_space<vmem>>, vector<128x128xbf16>
    %cst_8 = arith.constant dense<0.000000e+00> : vector<8x128xf32>
    %11 = tpu.matmul %9, %10, %cst_8 {dimension_numbers = #tpu.dot_dimension_numbers<[1], [0], [0], [1], [0, 0, 1, 1], [], []>} : vector<8x128xbf16>, vector<128x128xbf16>, vector<8x128xf32> -> vector<8x128xf32>
    %c0_9 = arith.constant 0 : index
    %c0_10 = arith.constant 0 : index
    %12 = vector.load %arg5[%c0_9, %c0_10] : memref<1x128xf32, #tpu.memory_space<vmem>>, vector<1x128xf32>
    %13 = vector.broadcast %12 : vector<1x128xf32> to vector<8x128xf32>
    %14 = arith.addf %11, %13 : vector<8x128xf32>
    %cst_11 = arith.constant 0.000000e+00 : f32
    %15 = vector.broadcast %cst_11 : f32 to vector<8x128xf32>
    %16 = arith.maximumf %14, %15 : vector<8x128xf32>
    %17 = arith.truncf %16 : vector<8x128xf32> to vector<8x128xbf16>
    %c0_12 = arith.constant 0 : index
    %c0_13 = arith.constant 0 : index
    %18 = vector.load %arg6[%c0_12, %c0_13] : memref<128x128xbf16, #tpu.memory_space<vmem>>, vector<128x128xbf16>
    %cst_14 = arith.constant dense<0.000000e+00> : vector<8x128xf32>
    %19 = tpu.matmul %17, %18, %cst_14 {dimension_numbers = #tpu.dot_dimension_numbers<[1], [0], [0], [1], [0, 0, 1, 1], [], []>} : vector<8x128xbf16>, vector<128x128xbf16>, vector<8x128xf32> -> vector<8x128xf32>
    %c0_15 = arith.constant 0 : index
    %c0_16 = arith.constant 0 : index
    %20 = vector.load %arg7[%c0_15, %c0_16] : memref<1x128xf32, #tpu.memory_space<vmem>>, vector<1x128xf32>
    %21 = vector.broadcast %20 : vector<1x128xf32> to vector<8x128xf32>
    %22 = arith.addf %19, %21 : vector<8x128xf32>
    %c0_17 = arith.constant 0 : index
    %c0_18 = arith.constant 0 : index
    %23 = vector.load %arg8[%c0_17, %c0_18] : memref<8x128xf32, #tpu.memory_space<vmem>>, vector<8x128xf32>
    tpu.vector_store %arg8[%c0_17, %c0_18], %22 {strides = array<i32>} : memref<8x128xf32, #tpu.memory_space<vmem>>, vector<8x128xf32>,
    return
  }
  func.func @transform_0(%arg0: i32) -> (i32, i32) {
    %c0_i32 = arith.constant 0 : i32
    %c0_i32_0 = arith.constant 0 : i32
    return %arg0, %c0_i32 : i32, i32
  }
  func.func @transform_1(%arg0: i32) -> (i32, i32) {
    %c0_i32 = arith.constant 0 : i32
    %c0_i32_0 = arith.constant 0 : i32
    %c0_i32_1 = arith.constant 0 : i32
    return %c0_i32, %c0_i32_0 : i32, i32
  }
  func.func @transform_2(%arg0: i32) -> (i32, i32) {
    %c0_i32 = arith.constant 0 : i32
    %c0_i32_0 = arith.constant 0 : i32
    %c0_i32_1 = arith.constant 0 : i32
    return %c0_i32, %c0_i32_0 : i32, i32
  }
  func.func @transform_3(%arg0: i32) -> (i32, i32) {
    %c0_i32 = arith.constant 0 : i32
    %c0_i32_0 = arith.constant 0 : i32
    %c0_i32_1 = arith.constant 0 : i32
    return %c0_i32, %c0_i32_0 : i32, i32
  }
  func.func @transform_4(%arg0: i32) -> (i32, i32) {
    %c0_i32 = arith.constant 0 : i32
    %c0_i32_0 = arith.constant 0 : i32
    %c0_i32_1 = arith.constant 0 : i32
    return %c0_i32, %c0_i32_0 : i32, i32
  }
  func.func @transform_5(%arg0: i32) -> (i32, i32) {
    %c0_i32 = arith.constant 0 : i32
    %c0_i32_0 = arith.constant 0 : i32
    %c0_i32_1 = arith.constant 0 : i32
    return %c0_i32, %c0_i32_0 : i32, i32
  }
  func.func @transform_6(%arg0: i32) -> (i32, i32) {
    %c0_i32 = arith.constant 0 : i32
    %c0_i32_0 = arith.constant 0 : i32
    %c0_i32_1 = arith.constant 0 : i32
    return %c0_i32, %c0_i32_0 : i32, i32
  }
  func.func @transform_7(%arg0: i32) -> (i32, i32) {
    %c0_i32 = arith.constant 0 : i32
    %c0_i32_0 = arith.constant 0 : i32
    return %arg0, %c0_i32 : i32, i32
  }
}

module attributes {stable_mosaic.version = 11 : i64} {
  func.func @mlp_kernel(%arg0: i32, %arg1: memref<8x16xf32, #tpu.memory_space<vmem>>, %arg2: memref<16x128xbf16, #tpu.memory_space<vmem>>, %arg3: memref<1x128xf32, #tpu.memory_space<vmem>>, %arg4: memref<128x128xbf16, #tpu.memory_space<vmem>>, %arg5: memref<1x128xf32, #tpu.memory_space<vmem>>, %arg6: memref<128x128xbf16, #tpu.memory_space<vmem>>, %arg7: memref<1x128xf32, #tpu.memory_space<vmem>>, %arg8: memref<8x128xf32, #tpu.memory_space<vmem>>) attributes {dimension_semantics = [#tpu.dimension_semantics<parallel>], iteration_bounds = array<i64: 1>, scalar_prefetch = 0 : i64, scratch_operands = 0 : i64, tpu.core_type = #tpu.core_type<tc>, window_params = [{transform_indices = @transform_0, window_bounds = array<i64: 8, 16>}, {pipeline_mode = #tpu.pipeline_mode<synchronous>, transform_indices = @transform_1, window_bounds = array<i64: 16, 128>}, {pipeline_mode = #tpu.pipeline_mode<synchronous>, transform_indices = @transform_2, window_bounds = array<i64: 1, 128>}, {pipeline_mode = #tpu.pipeline_mode<synchronous>, transform_indices = @transform_3, window_bounds = array<i64: 128, 128>}, {pipeline_mode = #tpu.pipeline_mode<synchronous>, transform_indices = @transform_4, window_bounds = array<i64: 1, 128>}, {pipeline_mode = #tpu.pipeline_mode<synchronous>, transform_indices = @transform_5, window_bounds = array<i64: 128, 128>}, {pipeline_mode = #tpu.pipeline_mode<synchronous>, transform_indices = @transform_6, window_bounds = array<i64: 1, 128>}, {transform_indices = @transform_7, window_bounds = array<i64: 8, 128>}]} {
    %c0 = arith.constant 0 : index
    %c0_0 = arith.constant 0 : index
    %0 = vector.load %arg1[%c0, %c0_0] : memref<8x16xf32, #tpu.memory_space<vmem>>, vector<8x16xf32>
    %1 = arith.truncf %0 : vector<8x16xf32> to vector<8x16xbf16>
    %c0_1 = arith.constant 0 : index
    %c0_2 = arith.constant 0 : index
    %2 = vector.load %arg2[%c0_1, %c0_2] : memref<16x128xbf16, #tpu.memory_space<vmem>>, vector<16x128xbf16>
    %cst = arith.constant dense<0.000000e+00> : vector<8x128xf32>
    %3 = tpu.matmul %1, %2, %cst {dimension_numbers = #tpu.dot_dimension_numbers<[1], [0], [0], [1], [0, 0, 1, 1], [], []>} : vector<8x16xbf16>, vector<16x128xbf16>, vector<8x128xf32> -> vector<8x128xf32>
    %c0_3 = arith.constant 0 : index
    %c0_4 = arith.constant 0 : index
    %4 = vector.load %arg3[%c0_3, %c0_4] : memref<1x128xf32, #tpu.memory_space<vmem>>, vector<1x128xf32>
    %5 = vector.broadcast %4 : vector<1x128xf32> to vector<8x128xf32>
    %6 = arith.addf %3, %5 : vector<8x128xf32>
    %cst_5 = arith.constant 0.000000e+00 : f32
    %7 = vector.broadcast %cst_5 : f32 to vector<8x128xf32>
    %8 = arith.maximumf %6, %7 : vector<8x128xf32>
    %9 = arith.truncf %8 : vector<8x128xf32> to vector<8x128xbf16>
    %c0_6 = arith.constant 0 : index
    %c0_7 = arith.constant 0 : index
    %10 = vector.load %arg4[%c0_6, %c0_7] : memref<128x128xbf16, #tpu.memory_space<vmem>>, vector<128x128xbf16>
    %cst_8 = arith.constant dense<0.000000e+00> : vector<8x128xf32>
    %11 = tpu.matmul %9, %10, %cst_8 {dimension_numbers = #tpu.dot_dimension_numbers<[1], [0], [0], [1], [0, 0, 1, 1], [], []>} : vector<8x128xbf16>, vector<128x128xbf16>, vector<8x128xf32> -> vector<8x128xf32>
    %c0_9 = arith.constant 0 : index
    %c0_10 = arith.constant 0 : index
    %12 = vector.load %arg5[%c0_9, %c0_10] : memref<1x128xf32, #tpu.memory_space<vmem>>, vector<1x128xf32>
    %13 = vector.broadcast %12 : vector<1x128xf32> to vector<8x128xf32>
    %14 = arith.addf %11, %13 : vector<8x128xf32>
    %cst_11 = arith.constant 0.000000e+00 : f32
    %15 = vector.broadcast %cst_11 : f32 to vector<8x128xf32>
    %16 = arith.maximumf %14, %15 : vector<8x128xf32>
    %17 = arith.truncf %16 : vector<8x128xf32> to vector<8x128xbf16>
    %c0_12 = arith.constant 0 : index
    %c0_13 = arith.constant 0 : index
    %18 = vector.load %arg6[%c0_12, %c0_13] : memref<128x128xbf16, #tpu.memory_space<vmem>>, vector<128x128xbf16>
    %cst_14 = arith.constant dense<0.000000e+00> : vector<8x128xf32>
    %19 = tpu.matmul %17, %18, %cst_14 {dimension_numbers = #tpu.dot_dimension_numbers<[1], [0], [0], [1], [0, 0, 1, 1], [], []>} : vector<8x128xbf16>, vector<128x128xbf16>, vector<8x128xf32> -> vector<8x128xf32>
    %c0_15 = arith.constant 0 : index
    %c0_16 = arith.constant 0 : index
    %20 = vector.load %arg7[%c0_15, %c0_16] : memref<1x128xf32, #tpu.memory_space<vmem>>, vector<1x128xf32>
    %21 = vector.broadcast %20 : vector<1x128xf32> to vector<8x128xf32>
    %22 = arith.addf %19, %21 : vector<8x128xf32>
    %c0_17 = arith.constant 0 : index
    %c0_18 = arith.constant 0 : index
    %23 = vector.load %arg8[%c0_17, %c0_18] : memref<8x128xf32, #tpu.memory_space<vmem>>, vector<8x128xf32>
    tpu.vector_store %arg8[%c0_17, %c0_18], %22 {strides = array<i32>} : memref<8x128xf32, #tpu.memory_space<vmem>>, vector<8x128xf32>,
    return
  }
  func.func @transform_0(%arg0: i32) -> (i32, i32) {
    %c0_i32 = arith.constant 0 : i32
    %c0_i32_0 = arith.constant 0 : i32
    return %arg0, %c0_i32 : i32, i32
  }
  func.func @transform_1(%arg0: i32) -> (i32, i32) {
    %c0_i32 = arith.constant 0 : i32
    %c0_i32_0 = arith.constant 0 : i32
    %c0_i32_1 = arith.constant 0 : i32
    return %c0_i32, %c0_i32_0 : i32, i32
  }
  func.func @transform_2(%arg0: i32) -> (i32, i32) {
    %c0_i32 = arith.constant 0 : i32
    %c0_i32_0 = arith.constant 0 : i32
    %c0_i32_1 = arith.constant 0 : i32
    return %c0_i32, %c0_i32_0 : i32, i32
  }
  func.func @transform_3(%arg0: i32) -> (i32, i32) {
    %c0_i32 = arith.constant 0 : i32
    %c0_i32_0 = arith.constant 0 : i32
    %c0_i32_1 = arith.constant 0 : i32
    return %c0_i32, %c0_i32_0 : i32, i32
  }
  func.func @transform_4(%arg0: i32) -> (i32, i32) {
    %c0_i32 = arith.constant 0 : i32
    %c0_i32_0 = arith.constant 0 : i32
    %c0_i32_1 = arith.constant 0 : i32
    return %c0_i32, %c0_i32_0 : i32, i32
  }
  func.func @transform_5(%arg0: i32) -> (i32, i32) {
    %c0_i32 = arith.constant 0 : i32
    %c0_i32_0 = arith.constant 0 : i32
    %c0_i32_1 = arith.constant 0 : i32
    return %c0_i32, %c0_i32_0 : i32, i32
  }
  func.func @transform_6(%arg0: i32) -> (i32, i32) {
    %c0_i32 = arith.constant 0 : i32
    %c0_i32_0 = arith.constant 0 : i32
    %c0_i32_1 = arith.constant 0 : i32
    return %c0_i32, %c0_i32_0 : i32, i32
  }
  func.func @transform_7(%arg0: i32) -> (i32, i32) {
    %c0_i32 = arith.constant 0 : i32
    %c0_i32_0 = arith.constant 0 : i32
    return %arg0, %c0_i32 : i32, i32
  }
}

</mosaic_0001>

<bundles_post_ra>
// kernel: network_forward.1
= control target key start
LH: loop header
LB: loop body
LE: loop exit
PB: predicated region body
PF: predicated region fallthrough
CT: control target
= control target key end

     0   :  { %12 = vsyncpa [#allocation3], 0  ;;  %s665_s0 = inlined_call_operand.vmem [shape: f32[8,16], index: 0, kind: input, shape index: {}]   ;;  %s666_s1 = inlined_call_operand.vmem [shape: bf16[16,128], index: 1, kind: input, shape index: {}]   ;;  %s667_s2 = inlined_call_operand.hbm [shape: f32[1,128], index: 2, kind: input, shape index: {}]   ;;  %s668_s3 = inlined_call_operand.hbm [shape: bf16[128,128], index: 3, kind: input, shape index: {}]   ;;  %s669_s4 = inlined_call_operand.vmem [shape: f32[1,128], index: 4, kind: input, shape index: {}]   ;;  %s670_s5 = inlined_call_operand.hbm [shape: bf16[128,128], index: 5, kind: input, shape index: {}]   ;;  %s671_s6 = inlined_call_operand.vmem [shape: f32[1,128], index: 6, kind: input, shape index: {}]   ;;  %s672_s7 = inlined_call_operand.vmem [shape: f32[8,128], index: 7, kind: output, shape index: {}]  }
   0x1   :  { %13 = vsyncpa [#allocation5], 0  ;;  %s541_s24 = smov [#allocation4]   ;;  %s471_s28 = scalar_lea.hbm %s668_s3, 1024 }
   0x2   :  { %s33_s25 = sshll.u32 %s541_s24, 4  ;;  %p472_p0 = scmp.ne.s32.totalorder %s668_s3, %s471_s28  ;;  %s34_s25 = int_to_ptr.vmem [resolvable:$true] %s33_s25 }
   0x3   :  { %p475_p1 = scmp.lt.u32.totalorder %s471_s28, %s668_s3 }
   0x5   :  { %p477_p2 = pnand %p475_p1, %p472_p0 }
   0x7   :  { %480 = shalt.err (!%p477_p2)
}
   0x8   :  { %s481_s10 = scalar_lea.vmem %s34_s25, 1024  ;;  %p486_p4 = scmp.lt.s32.totalorder %s34_s25, %s34_s25 }
   0x9   :  { %p482_p3 = scmp.ne.s32.totalorder %s34_s25, %s481_s10  ;;  %p487_p5 = scmp.lt.s32.totalorder %s481_s10, %s481_s10 }
   0xb   :  { %p488_p6 = por %p487_p5, %p486_p4 }
   0xd   :  { %p489_p7 = pnand %p488_p6, %p482_p3 }
   0xf   :  { %492 = shalt.err (!%p489_p7)
}
  0x10   :  { %s542_s11 = smov 64   ;;  %s543_s12 = smov 4  }
  0x11   :  { %39 = dma.hbm_to_vmem [thread:$0]  %s668_s3, 1024, %s34_s25, [#allocation5], %s542_s11, %s542_s11, %s543_s12  }
  0x12   :  { %s544_s15 = smov [#allocation2]   ;;  %s545_s17 = smov [#allocation6]  }
  0x13   :  { %s24_s16 = sshll.u32 %s544_s15, 4  ;;  %s47_s18 = sshll.u32 %s545_s17, 4  ;;  %s25_s16 = int_to_ptr.vmem [resolvable:$true] %s24_s16  ;;  %s48_s18 = int_to_ptr.vmem [resolvable:$true] %s47_s18 }
  0x14   :  { %s493_s21 = scalar_lea.hbm %s667_s2, 16 }
  0x15   :  { %p494_p8 = scmp.ne.s32.totalorder %s667_s2, %s493_s21  ;;  %p497_p9 = scmp.lt.u32.totalorder %s493_s21, %s667_s2 }
  0x17   :  { %p499_p10 = pnand %p497_p9, %p494_p8 }
  0x19   :  { %502 = shalt.err (!%p499_p10)
}
  0x1a   :  { %s503_s3 = scalar_lea.vmem %s25_s16, 16  ;;  %s507_s25 = scalar_lea.vmem %s25_s16, 32 }
  0x1b   :  { %p504_p11 = scmp.ne.s32.totalorder %s25_s16, %s503_s3  ;;  %p508_p12 = scmp.lt.s32.totalorder %s25_s16, %s25_s16 }
  0x1c   :  { %p509_p13 = scmp.lt.s32.totalorder %s507_s25, %s503_s3 }
  0x1e   :  { %p510_p0 = por %p509_p13, %p508_p12 }
  0x20   :  { %p511_p1 = pnand %p510_p0, %p504_p11 }
  0x22   :  { %514 = shalt.err (!%p511_p1)
}
  0x23   :  { %27 = dma.hbm_to_vmem [thread:$0]  %s667_s2, 16, %s25_s16, [#allocation3]  }
  0x24   :  { %s515_s8 = scalar_lea.hbm %s670_s5, 1024 }
  0x25   :  { %p516_p2 = scmp.ne.s32.totalorder %s670_s5, %s515_s8  ;;  %p519_p3 = scmp.lt.u32.totalorder %s515_s8, %s670_s5 }
  0x27   :  { %p521_p4 = pnand %p519_p3, %p516_p2 }
  0x29   :  { %524 = shalt.err (!%p521_p4)
}
  0x2a   :  { %s525_s15 = scalar_lea.vmem %s48_s18, 1024  ;;  %p530_p6 = scmp.lt.s32.totalorder %s48_s18, %s48_s18 }
  0x2b   :  { %p526_p5 = scmp.ne.s32.totalorder %s48_s18, %s525_s15  ;;  %p531_p7 = scmp.lt.s32.totalorder %s525_s15, %s525_s15 }
  0x2d   :  { %p532_p8 = por %p531_p7, %p530_p6 }
  0x2f   :  { %p533_p9 = pnand %p532_p8, %p526_p5 }
  0x31   :  { %536 = shalt.err (!%p533_p9)
}
  0x32   :  { %53 = dma.hbm_to_vmem [thread:$0]  %s670_s5, 1024, %s48_s18, [#allocation5], %s542_s11, %s542_s11, %s543_s12  }
  0x33   :  { %537 = dma.done.wait [#allocation3], 16  }
  0x34   :  { %538 = vsyncadd [#allocation3], 4294967280 }
  0x35   :  { %539 = dma.done.wait [#allocation5], 2048  }
  0x36   :  { %540 = vsyncadd [#allocation5], 4294965248  ;;  %v546_v0 = vmov 0.0   ;;  %vm547_vm0 = vmmov 0   ;;  %v454_v1 = vld [vmem:[%s666_s1] sm:$0xff]   ;;  %vm83_vm1 = vcmask 130048  }
  0x37   :  { %401 = vmatprep.subr.bf16.mxu0 %v546_v0  ;;  %403 = vmatprep.mubr.msk.bf16.mxu0 %vm547_vm0, %v546_v0  ;;  %v66_v2 = vld [vmem:[%s665_s0] sm:$0xff]  ;;  %v456_v5 = vld [vmem:[#allocation4 + $0x8] sm:$0xff]   ;;  %v457_v6 = vld [vmem:[#allocation4 + $0x10] sm:$0xff]  }
  0x38   :  { %407 = vmatprep.subr.bf16.mxu1 %v546_v0  ;;  %423 = vmatprep.mubr.msk.bf16.mxu1 %vm547_vm0, %v546_v0  ;;  %v67_v3 = vpack.c.bf16 %v66_v2, %v66_v2  ;;  %v455_v4 = vld [vmem:[#allocation4] sm:$0xff]   ;;  %v458_v7 = vld [vmem:[#allocation4 + $0x18] sm:$0xff]   ;;  %v460_v9 = vld [vmem:[#allocation4 + $0x28] sm:$0xff]  }
  0x39   :  { %402 = vmatpush3.bf16.msra.mxu0 %v454_v1  ;;  %408 = vmatpush3.bf16.msra.mxu1 %v455_v4  ;;  %v459_v8 = vld [vmem:[#allocation4 + $0x20] sm:$0xff]   ;;  %v461_v10 = vld [vmem:[#allocation4 + $0x30] sm:$0xff]   ;;  %v462_v11 = vld [vmem:[#allocation4 + $0x38] sm:$0xff]  }
  0x3a   :  { %427 = vmatprep.subr.bf16.mxu0 %v546_v0  ;;  %409 = vmatprep.subr.bf16.mxu1 %v546_v0  ;;  %v463_v12 = vld [vmem:[#allocation6] sm:$0xff]   ;;  %v464_v13 = vld [vmem:[#allocation6 + $0x8] sm:$0xff]   ;;  %v465_v14 = vld [vmem:[#allocation6 + $0x10] sm:$0xff]  }
  0x3b   :  { %v466_v15 = vld [vmem:[#allocation6 + $0x18] sm:$0xff]   ;;  %v467_v16 = vld [vmem:[#allocation6 + $0x20] sm:$0xff]   ;;  %v468_v17 = vld [vmem:[#allocation6 + $0x28] sm:$0xff]  }
  0x3c   :  { %404 = vmatmul.mubr.msk.bf16.vlgmr.msra.gmra.mrb[0].mxu0 %vm83_vm1, %v67_v3  ;;  %v360_v18 = vld [vmem:[#allocation2] ss:$0 sm:$0xff]  ;;  %v469_v26 = vld [vmem:[#allocation6 + $0x30] sm:$0xff]  }
  0x3d   :  { %443 = vmatprep.mubr.msk.bf16.mxu0 %vm547_vm0, %v546_v0  ;;  %410 = vmatpush3.bf16.msra.mxu1 %v456_v5  ;;  %v470_v27 = vld [vmem:[#allocation6 + $0x38] sm:$0xff]  }
  0x3e   :  { %411 = vmatprep.subr.bf16.mxu1 %v546_v0  ;;  %428 = vmatpush3.bf16.msra.mxu0 %v463_v12  ;;  %v363_v28 = vld [vmem:[%s669_s4] ss:$0 sm:$0xff] }
  0x3f   :  { %429 = vmatprep.subr.bf16.mxu0 %v546_v0  ;;  %v372_v36 = vld [vmem:[%s671_s6] ss:$0 sm:$0xff] }
  0x41   :  { %412 = vmatpush3.bf16.msra.mxu1 %v457_v6 }
  0x42   :  { %413 = vmatprep.subr.bf16.mxu1 %v546_v0  ;;  %430 = vmatpush3.bf16.msra.mxu0 %v464_v13 }
  0x43   :  { %431 = vmatprep.subr.bf16.mxu0 %v546_v0 }
  0x45   :  { %414 = vmatpush3.bf16.msra.mxu1 %v458_v7 }
  0x46   :  { %415 = vmatprep.subr.bf16.mxu1 %v546_v0  ;;  %432 = vmatpush3.bf16.msra.mxu0 %v465_v14 }
  0x47   :  { %433 = vmatprep.subr.bf16.mxu0 %v546_v0 }
  0x49   :  { %416 = vmatpush3.bf16.msra.mxu1 %v459_v8 }
  0x4a   :  { %417 = vmatprep.subr.bf16.mxu1 %v546_v0  ;;  %434 = vmatpush3.bf16.msra.mxu0 %v466_v15 }
  0x4b   :  { %435 = vmatprep.subr.bf16.mxu0 %v546_v0 }
  0x4d   :  { %418 = vmatpush3.bf16.msra.mxu1 %v460_v9 }
  0x4e   :  { %419 = vmatprep.subr.bf16.mxu1 %v546_v0  ;;  %436 = vmatpush3.bf16.msra.mxu0 %v467_v16 }
  0x4f   :  { %437 = vmatprep.subr.bf16.mxu0 %v546_v0 }
  0x51   :  { %420 = vmatpush3.bf16.msra.mxu1 %v461_v10 }
  0x52   :  { %421 = vmatprep.subr.bf16.mxu1 %v546_v0  ;;  %438 = vmatpush3.bf16.msra.mxu0 %v468_v17 }
  0x53   :  { %439 = vmatprep.subr.bf16.mxu0 %v546_v0 }
  0x55   :  { %422 = vmatpush3.bf16.msra.mxu1 %v462_v11 }
  0x56   :  { %440 = vmatpush3.bf16.msra.mxu0 %v469_v26 }
  0x57   :  { %441 = vmatprep.subr.bf16.mxu0 %v546_v0 }
  0x5a   :  { %442 = vmatpush3.bf16.msra.mxu0 %v470_v27 }
 0x10f   :  { %v121_v19 = vpop.f32.mrb[0].mxu0 }
 0x110   :  { %v122_v20 = vadd.f32 %v360_v18, %v121_v19  ;;  %v405_v21 = vpop.f32.mrb[1].mxu0 }
 0x111   :  { %v124_v22 = vpop.f32.mrb[2].mxu0 }
 0x112   :  { %v127_v23 = vmax.f32 %v122_v20, 0.0  ;;  %v406_v24 = vpop.f32.mrb[3].mxu0 }
 0x114   :  { %v128_v25 = vpack.c.bf16 %v127_v23, %v127_v23 }
 0x116   :  { %424 = vmatmul.mubr.bf16.vlgmr.msra.gmra.mrb[0].mxu1 %v128_v25 }
 0x1e9   :  { %v234_v29 = vpop.f32.mrb[0].mxu1 }
 0x1ea   :  { %v235_v30 = vadd.f32 %v363_v28, %v234_v29  ;;  %v425_v31 = vpop.f32.mrb[1].mxu1 }
 0x1eb   :  { %v237_v32 = vpop.f32.mrb[2].mxu1 }
 0x1ec   :  { %v240_v33 = vmax.f32 %v235_v30, 0.0  ;;  %v426_v34 = vpop.f32.mrb[3].mxu1 }
 0x1ee   :  { %v241_v35 = vpack.c.bf16 %v240_v33, %v240_v33 }
 0x1f0   :  { %444 = vmatmul.mubr.bf16.vlgmr.msra.gmra.mrb[4].mxu0 %v241_v35 }
 0x2c3   :  { %v347_v37 = vpop.f32.mrb[4].mxu0 }
 0x2c4   :  { %v348_v38 = vadd.f32 %v372_v36, %v347_v37  ;;  %v445_v39 = vpop.f32.mrb[5].mxu0 }
 0x2c5   :  { %v350_v40 = vpop.f32.mrb[6].mxu0 }
 0x2c6   :  { %353 = vst [vmem:[%s672_s7] sm:$0xff] %v348_v38  ;;  %v446_v41 = vpop.f32.mrb[7].mxu0 }
 0x2c7   :  { %358 = vsyncpa [#allocation3], 1 }
 0x2c8   :  { %359 = vsyncpa [#allocation5], 1 }

// kernel: network_forward.1
= control target key start
LH: loop header
LB: loop body
LE: loop exit
PB: predicated region body
PF: predicated region fallthrough
CT: control target
= control target key end

     0   :  { %12 = vsyncpa [#allocation3], 0  ;;  %s665_s0 = inlined_call_operand.vmem [shape: f32[8,16], index: 0, kind: input, shape index: {}]   ;;  %s666_s1 = inlined_call_operand.vmem [shape: bf16[16,128], index: 1, kind: input, shape index: {}]   ;;  %s667_s2 = inlined_call_operand.hbm [shape: f32[1,128], index: 2, kind: input, shape index: {}]   ;;  %s668_s3 = inlined_call_operand.hbm [shape: bf16[128,128], index: 3, kind: input, shape index: {}]   ;;  %s669_s4 = inlined_call_operand.vmem [shape: f32[1,128], index: 4, kind: input, shape index: {}]   ;;  %s670_s5 = inlined_call_operand.hbm [shape: bf16[128,128], index: 5, kind: input, shape index: {}]   ;;  %s671_s6 = inlined_call_operand.vmem [shape: f32[1,128], index: 6, kind: input, shape index: {}]   ;;  %s672_s7 = inlined_call_operand.vmem [shape: f32[8,128], index: 7, kind: output, shape index: {}]  }
   0x1   :  { %13 = vsyncpa [#allocation5], 0  ;;  %s541_s24 = smov [#allocation4]   ;;  %s471_s28 = scalar_lea.hbm %s668_s3, 1024 }
   0x2   :  { %s33_s25 = sshll.u32 %s541_s24, 4  ;;  %p472_p0 = scmp.ne.s32.totalorder %s668_s3, %s471_s28  ;;  %s34_s25 = int_to_ptr.vmem [resolvable:$true] %s33_s25 }
   0x3   :  { %p475_p1 = scmp.lt.u32.totalorder %s471_s28, %s668_s3 }
   0x5   :  { %p477_p2 = pnand %p475_p1, %p472_p0 }
   0x7   :  { %480 = shalt.err (!%p477_p2)
}
   0x8   :  { %s481_s10 = scalar_lea.vmem %s34_s25, 1024  ;;  %p486_p4 = scmp.lt.s32.totalorder %s34_s25, %s34_s25 }
   0x9   :  { %p482_p3 = scmp.ne.s32.totalorder %s34_s25, %s481_s10  ;;  %p487_p5 = scmp.lt.s32.totalorder %s481_s10, %s481_s10 }
   0xb   :  { %p488_p6 = por %p487_p5, %p486_p4 }
   0xd   :  { %p489_p7 = pnand %p488_p6, %p482_p3 }
   0xf   :  { %492 = shalt.err (!%p489_p7)
}
  0x10   :  { %s542_s11 = smov 64   ;;  %s543_s12 = smov 4  }
  0x11   :  { %39 = dma.hbm_to_vmem [thread:$0]  %s668_s3, 1024, %s34_s25, [#allocation5], %s542_s11, %s542_s11, %s543_s12  }
  0x12   :  { %s544_s15 = smov [#allocation2]   ;;  %s545_s17 = smov [#allocation6]  }
  0x13   :  { %s24_s16 = sshll.u32 %s544_s15, 4  ;;  %s47_s18 = sshll.u32 %s545_s17, 4  ;;  %s25_s16 = int_to_ptr.vmem [resolvable:$true] %s24_s16  ;;  %s48_s18 = int_to_ptr.vmem [resolvable:$true] %s47_s18 }
  0x14   :  { %s493_s21 = scalar_lea.hbm %s667_s2, 16 }
  0x15   :  { %p494_p8 = scmp.ne.s32.totalorder %s667_s2, %s493_s21  ;;  %p497_p9 = scmp.lt.u32.totalorder %s493_s21, %s667_s2 }
  0x17   :  { %p499_p10 = pnand %p497_p9, %p494_p8 }
  0x19   :  { %502 = shalt.err (!%p499_p10)
}
  0x1a   :  { %s503_s3 = scalar_lea.vmem %s25_s16, 16  ;;  %s507_s25 = scalar_lea.vmem %s25_s16, 32 }
  0x1b   :  { %p504_p11 = scmp.ne.s32.totalorder %s25_s16, %s503_s3  ;;  %p508_p12 = scmp.lt.s32.totalorder %s25_s16, %s25_s16 }
  0x1c   :  { %p509_p13 = scmp.lt.s32.totalorder %s507_s25, %s503_s3 }
  0x1e   :  { %p510_p0 = por %p509_p13, %p508_p12 }
  0x20   :  { %p511_p1 = pnand %p510_p0, %p504_p11 }
  0x22   :  { %514 = shalt.err (!%p511_p1)
}
  0x23   :  { %27 = dma.hbm_to_vmem [thread:$0]  %s667_s2, 16, %s25_s16, [#allocation3]  }
  0x24   :  { %s515_s8 = scalar_lea.hbm %s670_s5, 1024 }
  0x25   :  { %p516_p2 = scmp.ne.s32.totalorder %s670_s5, %s515_s8  ;;  %p519_p3 = scmp.lt.u32.totalorder %s515_s8, %s670_s5 }
  0x27   :  { %p521_p4 = pnand %p519_p3, %p516_p2 }
  0x29   :  { %524 = shalt.err (!%p521_p4)
}
  0x2a   :  { %s525_s15 = scalar_lea.vmem %s48_s18, 1024  ;;  %p530_p6 = scmp.lt.s32.totalorder %s48_s18, %s48_s18 }
  0x2b   :  { %p526_p5 = scmp.ne.s32.totalorder %s48_s18, %s525_s15  ;;  %p531_p7 = scmp.lt.s32.totalorder %s525_s15, %s525_s15 }
  0x2d   :  { %p532_p8 = por %p531_p7, %p530_p6 }
  0x2f   :  { %p533_p9 = pnand %p532_p8, %p526_p5 }
  0x31   :  { %536 = shalt.err (!%p533_p9)
}
  0x32   :  { %53 = dma.hbm_to_vmem [thread:$0]  %s670_s5, 1024, %s48_s18, [#allocation5], %s542_s11, %s542_s11, %s543_s12  }
  0x33   :  { %537 = dma.done.wait [#allocation3], 16  }
  0x34   :  { %538 = vsyncadd [#allocation3], 4294967280 }
  0x35   :  { %539 = dma.done.wait [#allocation5], 2048  }
  0x36   :  { %540 = vsyncadd [#allocation5], 4294965248  ;;  %v546_v0 = vmov 0.0   ;;  %vm547_vm0 = vmmov 0   ;;  %v454_v1 = vld [vmem:[%s666_s1] sm:$0xff]   ;;  %vm83_vm1 = vcmask 130048  }
  0x37   :  { %401 = vmatprep.subr.bf16.mxu0 %v546_v0  ;;  %403 = vmatprep.mubr.msk.bf16.mxu0 %vm547_vm0, %v546_v0  ;;  %v66_v2 = vld [vmem:[%s665_s0] sm:$0xff]  ;;  %v456_v5 = vld [vmem:[#allocation4 + $0x8] sm:$0xff]   ;;  %v457_v6 = vld [vmem:[#allocation4 + $0x10] sm:$0xff]  }
  0x38   :  { %407 = vmatprep.subr.bf16.mxu1 %v546_v0  ;;  %423 = vmatprep.mubr.msk.bf16.mxu1 %vm547_vm0, %v546_v0  ;;  %v67_v3 = vpack.c.bf16 %v66_v2, %v66_v2  ;;  %v455_v4 = vld [vmem:[#allocation4] sm:$0xff]   ;;  %v458_v7 = vld [vmem:[#allocation4 + $0x18] sm:$0xff]   ;;  %v460_v9 = vld [vmem:[#allocation4 + $0x28] sm:$0xff]  }
  0x39   :  { %402 = vmatpush3.bf16.msra.mxu0 %v454_v1  ;;  %408 = vmatpush3.bf16.msra.mxu1 %v455_v4  ;;  %v459_v8 = vld [vmem:[#allocation4 + $0x20] sm:$0xff]   ;;  %v461_v10 = vld [vmem:[#allocation4 + $0x30] sm:$0xff]   ;;  %v462_v11 = vld [vmem:[#allocation4 + $0x38] sm:$0xff]  }
  0x3a   :  { %427 = vmatprep.subr.bf16.mxu0 %v546_v0  ;;  %409 = vmatprep.subr.bf16.mxu1 %v546_v0  ;;  %v463_v12 = vld [vmem:[#allocation6] sm:$0xff]   ;;  %v464_v13 = vld [vmem:[#allocation6 + $0x8] sm:$0xff]   ;;  %v465_v14 = vld [vmem:[#allocation6 + $0x10] sm:$0xff]  }
  0x3b   :  { %v466_v15 = vld [vmem:[#allocation6 + $0x18] sm:$0xff]   ;;  %v467_v16 = vld [vmem:[#allocation6 + $0x20] sm:$0xff]   ;;  %v468_v17 = vld [vmem:[#allocation6 + $0x28] sm:$0xff]  }
  0x3c   :  { %404 = vmatmul.mubr.msk.bf16.vlgmr.msra.gmra.mrb[0].mxu0 %vm83_vm1, %v67_v3  ;;  %v360_v18 = vld [vmem:[#allocation2] ss:$0 sm:$0xff]  ;;  %v469_v26 = vld [vmem:[#allocation6 + $0x30] sm:$0xff]  }
  0x3d   :  { %443 = vmatprep.mubr.msk.bf16.mxu0 %vm547_vm0, %v546_v0  ;;  %410 = vmatpush3.bf16.msra.mxu1 %v456_v5  ;;  %v470_v27 = vld [vmem:[#allocation6 + $0x38] sm:$0xff]  }
  0x3e   :  { %411 = vmatprep.subr.bf16.mxu1 %v546_v0  ;;  %428 = vmatpush3.bf16.msra.mxu0 %v463_v12  ;;  %v363_v28 = vld [vmem:[%s669_s4] ss:$0 sm:$0xff] }
  0x3f   :  { %429 = vmatprep.subr.bf16.mxu0 %v546_v0  ;;  %v372_v36 = vld [vmem:[%s671_s6] ss:$0 sm:$0xff] }
  0x41   :  { %412 = vmatpush3.bf16.msra.mxu1 %v457_v6 }
  0x42   :  { %413 = vmatprep.subr.bf16.mxu1 %v546_v0  ;;  %430 = vmatpush3.bf16.msra.mxu0 %v464_v13 }
  0x43   :  { %431 = vmatprep.subr.bf16.mxu0 %v546_v0 }
  0x45   :  { %414 = vmatpush3.bf16.msra.mxu1 %v458_v7 }
  0x46   :  { %415 = vmatprep.subr.bf16.mxu1 %v546_v0  ;;  %432 = vmatpush3.bf16.msra.mxu0 %v465_v14 }
  0x47   :  { %433 = vmatprep.subr.bf16.mxu0 %v546_v0 }
  0x49   :  { %416 = vmatpush3.bf16.msra.mxu1 %v459_v8 }
  0x4a   :  { %417 = vmatprep.subr.bf16.mxu1 %v546_v0  ;;  %434 = vmatpush3.bf16.msra.mxu0 %v466_v15 }
  0x4b   :  { %435 = vmatprep.subr.bf16.mxu0 %v546_v0 }
  0x4d   :  { %418 = vmatpush3.bf16.msra.mxu1 %v460_v9 }
  0x4e   :  { %419 = vmatprep.subr.bf16.mxu1 %v546_v0  ;;  %436 = vmatpush3.bf16.msra.mxu0 %v467_v16 }
  0x4f   :  { %437 = vmatprep.subr.bf16.mxu0 %v546_v0 }
  0x51   :  { %420 = vmatpush3.bf16.msra.mxu1 %v461_v10 }
  0x52   :  { %421 = vmatprep.subr.bf16.mxu1 %v546_v0  ;;  %438 = vmatpush3.bf16.msra.mxu0 %v468_v17 }
  0x53   :  { %439 = vmatprep.subr.bf16.mxu0 %v546_v0 }
  0x55   :  { %422 = vmatpush3.bf16.msra.mxu1 %v462_v11 }
  0x56   :  { %440 = vmatpush3.bf16.msra.mxu0 %v469_v26 }
  0x57   :  { %441 = vmatprep.subr.bf16.mxu0 %v546_v0 }
  0x5a   :  { %442 = vmatpush3.bf16.msra.mxu0 %v470_v27 }
 0x10f   :  { %v121_v19 = vpop.f32.mrb[0].mxu0 }
 0x110   :  { %v122_v20 = vadd.f32 %v360_v18, %v121_v19  ;;  %v405_v21 = vpop.f32.mrb[1].mxu0 }
 0x111   :  { %v124_v22 = vpop.f32.mrb[2].mxu0 }
 0x112   :  { %v127_v23 = vmax.f32 %v122_v20, 0.0  ;;  %v406_v24 = vpop.f32.mrb[3].mxu0 }
 0x114   :  { %v128_v25 = vpack.c.bf16 %v127_v23, %v127_v23 }
 0x116   :  { %424 = vmatmul.mubr.bf16.vlgmr.msra.gmra.mrb[0].mxu1 %v128_v25 }
 0x1e9   :  { %v234_v29 = vpop.f32.mrb[0].mxu1 }
 0x1ea   :  { %v235_v30 = vadd.f32 %v363_v28, %v234_v29  ;;  %v425_v31 = vpop.f32.mrb[1].mxu1 }
 0x1eb   :  { %v237_v32 = vpop.f32.mrb[2].mxu1 }
 0x1ec   :  { %v240_v33 = vmax.f32 %v235_v30, 0.0  ;;  %v426_v34 = vpop.f32.mrb[3].mxu1 }
 0x1ee   :  { %v241_v35 = vpack.c.bf16 %v240_v33, %v240_v33 }
 0x1f0   :  { %444 = vmatmul.mubr.bf16.vlgmr.msra.gmra.mrb[4].mxu0 %v241_v35 }
 0x2c3   :  { %v347_v37 = vpop.f32.mrb[4].mxu0 }
 0x2c4   :  { %v348_v38 = vadd.f32 %v372_v36, %v347_v37  ;;  %v445_v39 = vpop.f32.mrb[5].mxu0 }
 0x2c5   :  { %v350_v40 = vpop.f32.mrb[6].mxu0 }
 0x2c6   :  { %353 = vst [vmem:[%s672_s7] sm:$0xff] %v348_v38  ;;  %v446_v41 = vpop.f32.mrb[7].mxu0 }
 0x2c7   :  { %358 = vsyncpa [#allocation3], 1 }
 0x2c8   :  { %359 = vsyncpa [#allocation5], 1 }

</bundles_post_ra>
